<compile_context>
chip_gen: v6e
topology: v6e:2x2x1
jax: 0.10.0
libtpu: 0.0.40
codegen_flags: <defaults>
</compile_context>

<pallas_src>
import math

import jax
import jax.numpy as jnp
from jax.experimental import pallas as pl
from jax.experimental.pallas import tpu as pltpu


def _round_up(n, m):
    return ((n + m - 1) // m) * m


# ---------------------------------------------------------------------------
# pltpu.roll direction probe (run once, eagerly, before tracing the network).
# ---------------------------------------------------------------------------
_ROLL_SIGN = None


def _get_roll_sign():
    """Returns s so pltpu.roll(x, (s*delta) % N, ax)[..., m] == x[..., m+delta]."""
    global _ROLL_SIGN
    if _ROLL_SIGN is None:
        def probe(x_ref, o_ref):
            o_ref[...] = pltpu.roll(x_ref[...], 1, 1)

        x = jnp.broadcast_to(jnp.arange(128, dtype=jnp.float32)[None, :],
                             (8, 128))
        y = pl.pallas_call(
            probe, out_shape=jax.ShapeDtypeStruct((8, 128), jnp.float32))(x)
        first = float(jax.device_get(y)[0, 0])
        # numpy convention: out[0] == in[-1] == 127  ->  shift = (-delta) % N
        _ROLL_SIGN = -1 if first == 127.0 else 1
    return _ROLL_SIGN


# ---------------------------------------------------------------------------
# Fused 3x(conv3x3x3 + ReLU) block kernel, channels-first, voxels on lanes.
# ---------------------------------------------------------------------------
def _make_block_kernel(H, W, D, M, Mp, cins, cout, roll_sign):
    WD = W * D
    n_in = len(cins)
    offs = [(ah - 1, aw - 1, ad - 1)
            for ah in range(3) for aw in range(3) for ad in range(3)]

    def kernel(*refs):
        x_refs = refs[:n_in]
        w1_ref, b1_ref, w2_ref, b2_ref, w3_ref, b3_ref = refs[n_in:n_in + 6]
        o_ref = refs[n_in + 6]
        slab1_ref = refs[n_in + 7]
        slab2_ref = refs[n_in + 8]

        # Voxel-index decomposition and the 27 boundary masks, built once per
        # invocation from iota (hoisted out of the conv loops; no HBM coords).
        m_idx = jax.lax.broadcasted_iota(jnp.int32, (1, Mp), 1)
        h_idx = m_idx // WD
        w_idx = (m_idx % WD) // D
        d_idx = m_idx % D
        in_vol = m_idx < M
        masks = []
        for (oh, ow, od) in offs:
            valid = (in_vol
                     & (h_idx + oh >= 0) & (h_idx + oh < H)
                     & (w_idx + ow >= 0) & (w_idx + ow < W)
                     & (d_idx + od >= 0) & (d_idx + od < D))
            masks.append(valid.astype(jnp.float32))

        def fill_slab(slab_ref, x, ci, row0):
            # x: (ci, Mp) f32 value.  Lane shifts go to the XLU (pltpu.roll),
            # the boundary mask is a VPU multiply, stores are lane-dense.
            for t, (oh, ow, od) in enumerate(offs):
                delta = oh * WD + ow * D + od
                shifted = x if delta == 0 else pltpu.roll(
                    x, (roll_sign * delta) % Mp, 1)
                slab_ref[row0 + t * ci: row0 + (t + 1) * ci, :] = (
                    shifted * masks[t])

        def conv(slab_ref, w_ref, b_ref):
            acc = jnp.dot(w_ref[...], slab_ref[...].astype(jnp.bfloat16),
                          preferred_element_type=jnp.float32)
            return jnp.maximum(acc + b_ref[...], 0.0)

        # conv1: skip-concat folded into the slab (split-K over the inputs)
        row0 = 0
        for xr, ci in zip(x_refs, cins):
            fill_slab(slab1_ref, xr[...], ci, row0)
            row0 += 27 * ci
        h = conv(slab1_ref, w1_ref, b1_ref)

        # conv2 / conv3: intermediates never leave VMEM
        fill_slab(slab2_ref, h, cout, 0)
        h = conv(slab2_ref, w2_ref, b2_ref)
        fill_slab(slab2_ref, h, cout, 0)
        h = conv(slab2_ref, w3_ref, b3_ref)

        # lane-dense store; zero the lane-padding tail for the downstream glue
        o_ref[...] = h * in_vol.astype(jnp.float32)

    return kernel


def conv_block(xs, hwd, w1p, b1, w2p, b2, w3p, b3):
    """Fused 3x(conv3x3x3+ReLU) block on (B, Ci, Mp) channels-first tensors."""
    H, W, D = hwd
    M = H * W * D
    B, _, Mp = xs[0].shape
    cins = tuple(int(x.shape[1]) for x in xs)
    cout = int(b1.shape[0])
    K1 = 27 * sum(cins)
    K2 = 27 * cout

    in_specs = [pl.BlockSpec((None, ci, Mp), lambda b: (b, 0, 0)) for ci in cins]
    for wgt in (w1p, b1, w2p, b2, w3p, b3):
        in_specs.append(pl.BlockSpec(wgt.shape, lambda b: (0, 0)))

    flops = 2 * B * cout * Mp * (K1 + 2 * K2)
    bytes_accessed = (4 * B * Mp * (sum(cins) + cout)
                      + 2 * (w1p.size + w2p.size + w3p.size))

    kernel = _make_block_kernel(H, W, D, M, Mp, cins, cout, _get_roll_sign())
    return pl.pallas_call(
        kernel,
        out_shape=jax.ShapeDtypeStruct((B, cout, Mp), jnp.float32),
        grid=(B,),
        in_specs=in_specs,
        out_specs=pl.BlockSpec((None, cout, Mp), lambda b: (b, 0, 0)),
        scratch_shapes=[pltpu.VMEM((K1, Mp), jnp.float32),
                        pltpu.VMEM((K2, Mp), jnp.float32)],
        compiler_params=pltpu.CompilerParams(
            dimension_semantics=("parallel",),
            vmem_limit_bytes=48 * 1024 * 1024),
        cost_estimate=pl.CostEstimate(
            flops=flops, transcendentals=0, bytes_accessed=bytes_accessed),
    )(*xs, w1p, b1, w2p, b2, w3p, b3)


# ---------------------------------------------------------------------------
# metaCFT head: fused means/sigmas MLPs + affine + normal_filter.
# ---------------------------------------------------------------------------
def _make_metacft_kernel(H, W, D, C, NV):
    WD = W * D
    Hf, Wf, Df = float(H), float(W), float(D)

    def kernel(x_ref, w1m, b1m, w2m, b2m, w3m, b3m,
               w1s, b1s, w2s, b2s, w3s, b3s, wn, o_ref):
        i = pl.program_id(1)
        v = jax.lax.broadcasted_iota(jnp.int32, (6, NV), 1) + i * NV
        r = jax.lax.broadcasted_iota(jnp.int32, (6, NV), 0)
        hf = (v // WD).astype(jnp.float32)
        wf = ((v % WD) // D).astype(jnp.float32)
        df = (v % D).astype(jnp.float32)
        # generateCoordsToBoundary ordering d1..d6, stacked on sublanes
        coords = jnp.where(
            r == 0, hf, jnp.where(
                r == 1, Hf - 1.0 - hf, jnp.where(
                    r == 2, wf, jnp.where(
                        r == 3, Wf - 1.0 - wf, jnp.where(
                            r == 4, df, Df - 1.0 - df)))))
        coords = coords.astype(jnp.bfloat16)                      # (6, NV)

        def mlp(w1, b1, w2, b2, w3, b3):
            h1 = jnp.maximum(
                jnp.dot(w1[...], coords,
                        preferred_element_type=jnp.float32) + b1[...], 0.0)
            h2 = jnp.maximum(
                jnp.dot(w2[...], h1.astype(jnp.bfloat16),
                        preferred_element_type=jnp.float32) + b2[...], 0.0)
            return jnp.dot(w3[...], h2.astype(jnp.bfloat16),
                           preferred_element_type=jnp.float32) + b3[...]

        means = mlp(w1m, b1m, w2m, b2m, w3m, b3m)
        sigmas = mlp(w1s, b1s, w2s, b2s, w3s, b3s)
        y = x_ref[...] * sigmas + means                           # (C, NV)
        # normal_filter (1x1x1 conv, no bias) as a sublane reduction
        o_ref[...] = jnp.sum(y * wn[...], axis=0, keepdims=True)  # (1, NV)

    return kernel


def metacft(x_flat, hwd, p, NV=1024):
    """x_flat: (B, C, Mp) channels-first -> (B, 1, Mp)."""
    H, W, D = hwd
    B, C, Mp = x_flat.shape
    nv = min(NV, Mp)
    Mq = _round_up(Mp, nv)
    if Mq != Mp:
        x_flat = jnp.pad(x_flat, ((0, 0), (0, 0), (0, Mq - Mp)))
    n_tiles = Mq // nv

    weights = (
        p['w1m'].astype(jnp.bfloat16), p['b1m'].reshape(-1, 1),
        p['w2m'].astype(jnp.bfloat16), p['b2m'].reshape(-1, 1),
        p['w3m'].astype(jnp.bfloat16), p['b3m'].reshape(-1, 1),
        p['w1s'].astype(jnp.bfloat16), p['b1s'].reshape(-1, 1),
        p['w2s'].astype(jnp.bfloat16), p['b2s'].reshape(-1, 1),
        p['w3s'].astype(jnp.bfloat16), p['b3s'].reshape(-1, 1),
        jnp.transpose(p['wn']),                                   # (C, 1)
    )
    w_specs = [pl.BlockSpec(w.shape, lambda b, i: (0, 0)) for w in weights]

    flops = 2 * B * Mq * (2 * (6 * 64 + 64 * 64 + 64 * C) + 2 * C)
    bytes_accessed = 4 * B * Mq * (C + 1)

    kernel = _make_metacft_kernel(H, W, D, C, nv)
    out = pl.pallas_call(
        kernel,
        out_shape=jax.ShapeDtypeStruct((B, 1, Mq), jnp.float32),
        grid=(B, n_tiles),
        in_specs=[pl.BlockSpec((None, C, nv), lambda b, i: (b, 0, i))] + w_specs,
        out_specs=pl.BlockSpec((None, 1, nv), lambda b, i: (b, 0, i)),
        compiler_params=pltpu.CompilerParams(
            dimension_semantics=("parallel", "parallel")),
        cost_estimate=pl.CostEstimate(
            flops=flops, transcendentals=0, bytes_accessed=bytes_accessed),
    )(x_flat, *weights)
    return out[:, :, :Mp]


# ---------------------------------------------------------------------------
# Plain-JAX glue (layout-only, cheap at these sizes)
# ---------------------------------------------------------------------------
def avgpool2(x5):
    B, C, H, W, D = x5.shape
    return x5.reshape(B, C, H // 2, 2, W // 2, 2, D // 2, 2).mean(axis=(3, 5, 7))


def upsample2(x5):
    x5 = jnp.repeat(x5, 2, axis=2)
    x5 = jnp.repeat(x5, 2, axis=3)
    return jnp.repeat(x5, 2, axis=4)


def flatten_pad(x5):
    B, C, H, W, D = x5.shape
    M = H * W * D
    Mp = max(_round_up(M, 128), 128)
    flat = x5.reshape(B, C, M)
    if Mp != M:
        flat = jnp.pad(flat, ((0, 0), (0, 0), (0, Mp - M)))
    return flat


def unflatten(flat, hwd):
    H, W, D = hwd
    B, C, _ = flat.shape
    return flat[:, :, :H * W * D].reshape(B, C, H, W, D)


# ---------------------------------------------------------------------------
# Weight packing (torch Conv3d layout -> tap-major matmul layout)
# ---------------------------------------------------------------------------
def _pack_conv(w):
    """(O, I, 3, 3, 3) torch Conv3d weight -> (O, 27*I) bf16, tap-major."""
    O, I = w.shape[:2]
    return jnp.transpose(w, (0, 2, 3, 4, 1)).reshape(O, 27 * I).astype(
        jnp.bfloat16)


def _pack_bias(b):
    return b.reshape(-1, 1).astype(jnp.float32)


def _pack_down(blk):
    return (_pack_conv(blk['w1']), _pack_bias(blk['b1']),
            _pack_conv(blk['w2']), _pack_bias(blk['b2']),
            _pack_conv(blk['w3']), _pack_bias(blk['b3']))


def _pack_up(blk, c_up):
    w1 = blk['w1']
    w1p = jnp.concatenate(
        [_pack_conv(w1[:, :c_up]), _pack_conv(w1[:, c_up:])], axis=1)
    return (w1p, _pack_bias(blk['b1']),
            _pack_conv(blk['w2']), _pack_bias(blk['b2']),
            _pack_conv(blk['w3']), _pack_bias(blk['b3']))


# ---------------------------------------------------------------------------
# Parameters (deterministic synthetic init, torch weight layouts)
# ---------------------------------------------------------------------------
def init_params(key, input_channels, num_filters):
    keys = iter(jax.random.split(key, 128))

    def q(w):
        # round-trip through bf16 so the f32 reference and the bf16-MXU Pallas
        # path see identical weight values
        return w.astype(jnp.bfloat16).astype(jnp.float32)

    def conv_w(cin, c_out):
        return q(jax.random.normal(next(keys), (c_out, cin, 3, 3, 3),
                                   jnp.float32) / math.sqrt(cin * 27.0))

    def dense_w(c_out, cin):
        return q(jax.random.normal(next(keys), (c_out, cin), jnp.float32)
                 / math.sqrt(float(cin)))

    def bias(n):
        return jax.random.normal(next(keys), (n,), jnp.float32) * 0.01

    params = {'down': [], 'up': []}
    in_c = input_channels
    for nf in num_filters:
        params['down'].append({
            'w1': conv_w(in_c, nf), 'b1': bias(nf),
            'w2': conv_w(nf, nf), 'b2': bias(nf),
            'w3': conv_w(nf, nf), 'b3': bias(nf),
        })
        in_c = nf
    for i in range(len(num_filters) - 2, -1, -1):
        c_up, c_out = num_filters[i + 1], num_filters[i]
        params['up'].append({
            'w1': conv_w(c_up + c_out, c_out), 'b1': bias(c_out),
            'w2': conv_w(c_out, c_out), 'b2': bias(c_out),
            'w3': conv_w(c_out, c_out), 'b3': bias(c_out),
        })
    C = num_filters[0]
    params['final'] = {
        'w1m': dense_w(64, 6), 'b1m': bias(64),
        'w2m': dense_w(64, 64), 'b2m': bias(64),
        'w3m': dense_w(C, 64), 'b3m': bias(C),
        'w1s': dense_w(64, 6), 'b1s': bias(64),
        'w2s': dense_w(64, 64), 'b2s': bias(64),
        'w3s': dense_w(C, 64), 'b3s': bias(C),
        'wn': dense_w(1, C),
    }
    return params


# ---------------------------------------------------------------------------
# Full forward pass (Pallas path)
# ---------------------------------------------------------------------------
def unet_forward(x, params):
    """x: (B, Cin, H, W, D) torch layout -> (B, 1, H, W, D)."""
    B, _, H0, W0, D0 = x.shape
    hwd = (H0, W0, D0)
    cur = flatten_pad(x.astype(jnp.float32))
    skips = []
    n_down = len(params['down'])
    for i, blk in enumerate(params['down']):
        if i > 0:
            cur = flatten_pad(avgpool2(unflatten(cur, hwd)))
            hwd = (hwd[0] // 2, hwd[1] // 2, hwd[2] // 2)
        cur = conv_block([cur], hwd, *_pack_down(blk))
        if i != n_down - 1:
            skips.append((cur, hwd))
    for j, blk in enumerate(params['up']):
        skip, skip_hwd = skips[-j - 1]
        c_up = cur.shape[1]
        up = flatten_pad(upsample2(unflatten(cur, hwd)))
        hwd = skip_hwd
        cur = conv_block([up, skip], hwd, *_pack_up(blk, c_up))
    out = metacft(cur, hwd, params['final'])
    return out[:, :, :H0 * W0 * D0].reshape(B, 1, H0, W0, D0)


# ---------------------------------------------------------------------------
# Pure-JAX reference (same assumed architecture, f32 math) for self-checking
# ---------------------------------------------------------------------------
def ref_forward(x, params):
    def conv3(x5, w, b):
        Bb, Ci, Hh, Ww, Dd = x5.shape
        xp = jnp.pad(x5, ((0, 0), (0, 0), (1, 1), (1, 1), (1, 1)))
        out = jnp.zeros((Bb, w.shape[0], Hh, Ww, Dd), jnp.float32)
        for ah in range(3):
            for aw in range(3):
                for ad in range(3):
                    win = xp[:, :, ah:ah + Hh, aw:aw + Ww, ad:ad + Dd]
                    out = out + jnp.einsum('bchwd,oc->bohwd', win,
                                           w[:, :, ah, aw, ad])
        return out + b.reshape(1, -1, 1, 1, 1)

    def block(x5, blk):
        h = jax.nn.relu(conv3(x5, blk['w1'], blk['b1']))
        h = jax.nn.relu(conv3(h, blk['w2'], blk['b2']))
        return jax.nn.relu(conv3(h, blk['w3'], blk['b3']))

    cur = x.astype(jnp.float32)
    skips = []
    n_down = len(params['down'])
    for i, blk in enumerate(params['down']):
        if i > 0:
            cur = avgpool2(cur)
        cur = block(cur, blk)
        if i != n_down - 1:
            skips.append(cur)
    for j, blk in enumerate(params['up']):
        cur = block(jnp.concatenate([upsample2(cur), skips[-j - 1]], axis=1),
                    blk)

    Bb, _, Hh, Ww, Dd = cur.shape
    hg, wg, dg = jnp.meshgrid(jnp.arange(Hh, dtype=jnp.float32),
                              jnp.arange(Ww, dtype=jnp.float32),
                              jnp.arange(Dd, dtype=jnp.float32), indexing='ij')
    coords = jnp.stack([hg, Hh - 1.0 - hg, wg, Ww - 1.0 - wg,
                        dg, Dd - 1.0 - dg], axis=0)
    coords = jnp.broadcast_to(coords[None], (Bb, 6, Hh, Ww, Dd))
    fp = params['final']

    def mlp(sfx):
        h1 = jax.nn.relu(jnp.einsum('bcxyz,oc->boxyz', coords, fp['w1' + sfx])
                         + fp['b1' + sfx].reshape(1, -1, 1, 1, 1))
        h2 = jax.nn.relu(jnp.einsum('bcxyz,oc->boxyz', h1, fp['w2' + sfx])
                         + fp['b2' + sfx].reshape(1, -1, 1, 1, 1))
        return (jnp.einsum('bcxyz,oc->boxyz', h2, fp['w3' + sfx])
                + fp['b3' + sfx].reshape(1, -1, 1, 1, 1))

    y = cur * mlp('s') + mlp('m')
    return jnp.einsum('bcxyz,oc->boxyz', y, fp['wn'])


if __name__ == "__main__":
    input_channels = 1
    num_filters = [4, 8, 16]
    B, H, W, D = 2, 16, 16, 16

    key = jax.random.PRNGKey(0)
    kx, kp = jax.random.split(key)
    x = jax.random.normal(kx, (B, input_channels, H, W, D), jnp.float32)
    params = init_params(kp, input_channels, num_filters)

    _get_roll_sign()  # eager probe, before tracing the network kernels

    fwd = jax.jit(unet_forward)
    out = fwd(x, params)
    jax.block_until_ready(out)

    assert out.shape == (B, 1, H, W, D), out.shape
    assert bool(jnp.all(jnp.isfinite(out)))

    # Validate the Pallas lowering against the pure-JAX reference (bf16 MXU
    # operands vs f32 reference -> loose, scale-relative tolerance).
    ref = jax.jit(ref_forward)(x, params)
    jax.block_until_ready(ref)
    diff = float(jnp.max(jnp.abs(out - ref)))
    scale = float(jnp.max(jnp.abs(ref)))
    assert diff <= 0.15 * scale + 0.02, (diff, scale)

    print("KERNEL_OK")
</pallas_src>

<mosaic_0001>
module attributes {stable_mosaic.version = 11 : i64} {
  func.func @probe(%arg0: memref<8x128xf32, #tpu.memory_space<vmem>>, %arg1: memref<8x128xf32, #tpu.memory_space<vmem>>) attributes {dimension_semantics = [], scalar_prefetch = 0 : i64, scratch_operands = 0 : i64, tpu.core_type = #tpu.core_type<tc>} {
    %c0 = arith.constant 0 : index
    %c0_0 = arith.constant 0 : index
    %0 = vector.load %arg0[%c0, %c0_0] : memref<8x128xf32, #tpu.memory_space<vmem>>, vector<8x128xf32>
    %c1_i32 = arith.constant 1 : i32
    %1 = tpu.dynamic_rotate %0 by %c1_i32 dim 1 : vector<8x128xf32>, i32 -> vector<8x128xf32>
    %c0_1 = arith.constant 0 : index
    %c0_2 = arith.constant 0 : index
    %2 = vector.load %arg1[%c0_1, %c0_2] : memref<8x128xf32, #tpu.memory_space<vmem>>, vector<8x128xf32>
    tpu.vector_store %arg1[%c0_1, %c0_2], %1 {strides = array<i32>} : memref<8x128xf32, #tpu.memory_space<vmem>>, vector<8x128xf32>,
    return
  }
}

</mosaic_0001>

<bundles_post_ra>
// kernel: tpu_custom_call.1
= control target key start
LH: loop header
LB: loop body
LE: loop exit
PB: predicated region body
PF: predicated region fallthrough
CT: control target
= control target key end

     0   :  { %6 = vsyncpa [#allocation3], 0  ;;  %s106_s0 = inlined_call_operand.hbm [shape: f32[8,128], index: 0, kind: input, shape index: {}]   ;;  %s107_s1 = inlined_call_operand.hbm [shape: f32[8,128], index: 1, kind: output, shape index: {}]  }
   0x1   :  { %7 = vsyncpa [#allocation4], 0  ;;  %s87_s6 = smov [#allocation2]  }
   0x2   :  { %s14_s7 = sshll.u32 %s87_s6, 4  ;;  %s15_s7 = int_to_ptr.vmem [resolvable:$true] %s14_s7 }
   0x3   :  { %s51_s8 = scalar_lea.vmem %s15_s7, 128  ;;  %p56_p1 = scmp.lt.s32.totalorder %s15_s7, %s15_s7 }
   0x4   :  { %p52_p0 = scmp.ne.s32.totalorder %s15_s7, %s51_s8  ;;  %p57_p2 = scmp.lt.s32.totalorder %s51_s8, %s51_s8 }
   0x6   :  { %p58_p3 = por %p57_p2, %p56_p1 }
   0x8   :  { %p59_p4 = pnand %p58_p3, %p52_p0 }
   0xa   :  { %62 = shalt.err (!%p59_p4)
}
   0xb   :  { %17 = dma.hbm_to_vmem [thread:$0]  %s106_s0, 128, %s15_s7, [#allocation3]  }
   0xc   :  { %83 = dma.done.wait [#allocation3], 128  }
   0xd   :  { %84 = vsyncadd [#allocation3], 4294967168  ;;  %v21_v0 = vld [vmem:[#allocation2] sm:$0xff]  ;;  %s88_s11 = smov 1   ;;  %s89_s12 = smov [#allocation5]  }
   0xe   :  { %22 = vrot.lane.b32.xlu0 %v21_v0, %s88_s11  ;;  %s31_s13 = sshll.u32 %s89_s12, 4  ;;  %s32_s13 = int_to_ptr.vmem [resolvable:$true] %s31_s13 }
   0xf   :  { %s63_s14 = scalar_lea.vmem %s32_s13, 128  ;;  %p68_p6 = scmp.lt.s32.totalorder %s32_s13, %s32_s13 }
  0x10   :  { %p64_p5 = scmp.ne.s32.totalorder %s32_s13, %s63_s14  ;;  %p69_p7 = scmp.lt.s32.totalorder %s63_s14, %s63_s14 }
  0x12   :  { %p70_p8 = por %p69_p7, %p68_p6 }
  0x14   :  { %p71_p9 = pnand %p70_p8, %p64_p5 }
  0x80   :  { %v23_v1 = vpop.permute.xlu0 %22 }
  0x81   :  { %24 = vst [vmem:[#allocation5] sm:$0xff] %v23_v1 }
  0x82   :  { %74 = shalt.err (!%p71_p9)
}
  0x83   :  { %34 = dma.vmem_to_hbm [thread:$0]  %s32_s13, 128, %s107_s1, [#allocation4]  }
  0x84   :  { %85 = dma.done.wait [#allocation4], 128  }
  0x85   :  { %86 = vsyncadd [#allocation4], 4294967168 }
  0x86   :  { %38 = vsyncpa [#allocation3], 1 }
  0x87   :  { %39 = vsyncpa [#allocation4], 1 }

</bundles_post_ra>
